<compile_context>
chip_gen: v7x
topology: tpu7x:2x2x1
jax: 0.10.0
libtpu: 0.0.40
codegen_flags: <defaults>
</compile_context>

<pallas_src>
import math

import jax
import jax.numpy as jnp
from jax.experimental import pallas as pl
from jax.experimental.pallas import tpu as pltpu


def _weight_sum_kernel(x_ref, w_ref, o_ref):
    # x_ref: (B, tl, tn)   w_ref: (tl, tn)   o_ref: (B, tl)
    # o_ref is resident across the N-reduction grid axis (same output block
    # index for every n), so it doubles as the f32 accumulator.
    @pl.when(pl.program_id(1) == 0)
    def _():
        o_ref[...] = jnp.zeros_like(o_ref)

    # Fused broadcast-multiply + lane reduction for this (tl, tn) tile.
    o_ref[...] += jnp.sum(x_ref[...] * w_ref[...][None, :, :], axis=-1)


def weight_sum(x, w, *, tl=None, tn=None):
    """x: (B, l_vec, n_vec) f32; w: (l_vec, n_vec) f32 -> (B, l_vec) f32."""
    B, L, N = x.shape
    assert w.shape == (L, N), (w.shape, (L, N))

    # Tile choice: keep the output lane-dense (tl multiple of 128) when L
    # allows it, otherwise use the full extent (always legal).  Big N tiles
    # amortize the ~0.35 us per-grid-step overhead; fall back gracefully.
    if tl is None:
        tl = 128 if L % 128 == 0 else L
    if tn is None:
        if N % 512 == 0:
            tn = 512
        elif N % 128 == 0:
            tn = 128
        else:
            tn = N
    assert L % tl == 0 and N % tn == 0

    grid = (L // tl, N // tn)

    out = pl.pallas_call(
        _weight_sum_kernel,
        out_shape=jax.ShapeDtypeStruct((B, L), jnp.float32),
        grid_spec=pltpu.PrefetchScalarGridSpec(
            num_scalar_prefetch=0,
            grid=grid,
            in_specs=[
                pl.BlockSpec((B, tl, tn), lambda l, n: (0, l, n)),
                pl.BlockSpec((tl, tn), lambda l, n: (l, n)),
            ],
            out_specs=pl.BlockSpec((B, tl), lambda l, n: (0, l)),
        ),
        compiler_params=pltpu.CompilerParams(
            # L tiles are independent ("parallel", sharded across TCs on v7x);
            # N is the reduction axis, kept last and "arbitrary".
            dimension_semantics=("parallel", "arbitrary"),
        ),
    )(x, w)
    return out


def _reference(x, w):
    return jnp.sum(x * w[None, :, :], axis=2)


if __name__ == "__main__":
    # Small shapes consistent with the module: batch=2, l_vec=16, n_vec=256.
    B, L_VEC, N_VEC = 2, 16, 256

    key = jax.random.PRNGKey(0)
    kx, kw = jax.random.split(key)
    x = jax.random.normal(kx, (B, L_VEC, N_VEC), jnp.float32)
    bound = 1.0 / math.sqrt(L_VEC)  # matches nn.init.uniform_(-1/sqrt(l), 1/sqrt(l))
    w = jax.random.uniform(kw, (L_VEC, N_VEC), jnp.float32,
                           minval=-bound, maxval=bound)

    out = weight_sum(x, w)
    out = jax.block_until_ready(out)

    ref = _reference(x, w)
    assert out.shape == (B, L_VEC)
    assert jnp.allclose(out, ref, rtol=1e-5, atol=1e-5), float(
        jnp.max(jnp.abs(out - ref)))
    print("KERNEL_OK")
</pallas_src>

<mosaic_0001>
module attributes {stable_mosaic.version = 11 : i64} {
  func.func @_weight_sum_kernel(%arg0: i32, %arg1: i32, %arg2: memref<2x16x128xf32, #tpu.memory_space<vmem>>, %arg3: memref<16x128xf32, #tpu.memory_space<vmem>>, %arg4: memref<2x16xf32, #tpu.memory_space<vmem>>) attributes {dimension_semantics = [#tpu.dimension_semantics<parallel>, #tpu.dimension_semantics<arbitrary>], iteration_bounds = array<i64: 1, 2>, scalar_prefetch = 0 : i64, scratch_operands = 0 : i64, tpu.core_type = #tpu.core_type<tc>, window_params = [{transform_indices = @transform_0, window_bounds = array<i64: 2, 16, 128>}, {transform_indices = @transform_1, window_bounds = array<i64: 16, 128>}, {transform_indices = @transform_2, window_bounds = array<i64: 2, 16>}]} {
    %c0_i32 = arith.constant 0 : i32
    %0 = arith.cmpi eq, %arg1, %c0_i32 : i32
    %1 = arith.extui %0 : i1 to i32
    %c0_i32_0 = arith.constant 0 : i32
    %2 = arith.cmpi ne, %1, %c0_i32_0 : i32
    scf.if %2 {
      %cst_9 = arith.constant 0.000000e+00 : f32
      %12 = vector.broadcast %cst_9 : f32 to vector<2x16xf32>
      %c0_10 = arith.constant 0 : index
      %c0_11 = arith.constant 0 : index
      %13 = vector.load %arg4[%c0_10, %c0_11] : memref<2x16xf32, #tpu.memory_space<vmem>>, vector<2x16xf32>
      tpu.vector_store %arg4[%c0_10, %c0_11], %12 {strides = array<i32>} : memref<2x16xf32, #tpu.memory_space<vmem>>, vector<2x16xf32>,
    } else {
    }
    %c0 = arith.constant 0 : index
    %c0_1 = arith.constant 0 : index
    %3 = vector.load %arg4[%c0, %c0_1] : memref<2x16xf32, #tpu.memory_space<vmem>>, vector<2x16xf32>
    %c0_2 = arith.constant 0 : index
    %c0_3 = arith.constant 0 : index
    %c0_4 = arith.constant 0 : index
    %4 = vector.load %arg2[%c0_2, %c0_3, %c0_4] : memref<2x16x128xf32, #tpu.memory_space<vmem>>, vector<2x16x128xf32>
    %c0_5 = arith.constant 0 : index
    %c0_6 = arith.constant 0 : index
    %5 = vector.load %arg3[%c0_5, %c0_6] : memref<16x128xf32, #tpu.memory_space<vmem>>, vector<16x128xf32>
    %6 = vector.shape_cast %5 : vector<16x128xf32> to vector<1x16x128xf32>
    %7 = vector.broadcast %6 : vector<1x16x128xf32> to vector<2x16x128xf32>
    %8 = arith.mulf %4, %7 : vector<2x16x128xf32>
    %cst = arith.constant dense<0.000000e+00> : vector<2x16xf32>
    %9 = vector.multi_reduction <add>, %8, %cst [2] : vector<2x16x128xf32> to vector<2x16xf32>
    %10 = arith.addf %3, %9 : vector<2x16xf32>
    %c0_7 = arith.constant 0 : index
    %c0_8 = arith.constant 0 : index
    %11 = vector.load %arg4[%c0_7, %c0_8] : memref<2x16xf32, #tpu.memory_space<vmem>>, vector<2x16xf32>
    tpu.vector_store %arg4[%c0_7, %c0_8], %10 {strides = array<i32>} : memref<2x16xf32, #tpu.memory_space<vmem>>, vector<2x16xf32>,
    return
  }
  func.func @transform_0(%arg0: i32, %arg1: i32) -> (i32, i32, i32) {
    %c0_i32 = arith.constant 0 : i32
    %c0_i32_0 = arith.constant 0 : i32
    return %c0_i32, %arg0, %arg1 : i32, i32, i32
  }
  func.func @transform_1(%arg0: i32, %arg1: i32) -> (i32, i32) {
    %c0_i32 = arith.constant 0 : i32
    return %arg0, %arg1 : i32, i32
  }
  func.func @transform_2(%arg0: i32, %arg1: i32) -> (i32, i32) {
    %c0_i32 = arith.constant 0 : i32
    %c0_i32_0 = arith.constant 0 : i32
    return %c0_i32, %arg0 : i32, i32
  }
}

</mosaic_0001>

<bundles_post_ra>
// kernel: tpu_custom_call.1
= control target key start
LH: loop header
LB: loop body
LE: loop exit
PB: predicated region body
PF: predicated region fallthrough
CT: control target
= control target key end

     0   :  { %7 = vsyncpa [#allocation3], 0  ;;  %s834_s0 = inlined_call_operand.hbm [shape: f32[2,16,256], index: 0, kind: input, shape index: {}]   ;;  %s835_s1 = inlined_call_operand.hbm [shape: f32[16,256], index: 1, kind: input, shape index: {}]   ;;  %s836_s2 = inlined_call_operand.hbm [shape: f32[2,16], index: 2, kind: output, shape index: {}]  }
   0x1   :  { %9 = vsyncpa [#allocation3 + $0x1], 0 }
   0x2   :  { %10 = vsyncpa [#allocation6], 0 }
   0x3   :  { %12 = vsyncpa [#allocation6 + $0x1], 0 }
   0x4   :  { %13 = vsyncpa [#allocation4], 0  ;;  %s625_s9 = smov 0   ;;  %s627_s10 = smov 0  }
   0x5   :  { %s629_s11 = smov 0   ;;  %s631_s12 = smov 0  }
   0x6   :  { %s633_s13 = smov 0   ;;  %s635_s14 = smov 0  }
   0x7 LB: > { %s371_s15 = sadd.s32 4294967295, %s601_s14   ;;  %s28_s16 = sadd.s32 1, %s597_s13  ;;  %s601_s14 = sphi %s635_s14, %s19_s14   ;;  %s597_s13 = sphi %s633_s13, %s849_s13   ;;  %s593_s12 = sphi %s631_s12, %s848_s12   ;;  %s589_s11 = sphi %s629_s11, %s847_s11   ;;  %s585_s10 = sphi %s627_s10, %s846_s10   ;;  %s581_s9 = sphi %s625_s9, %s845_s9  }
   0x8   : > { %p29_p0 = scmp.ge.s32.totalorder %s28_s16, 2  ;;  %s40_s17 = sadd.s32 1, %s589_s11 }
   0x9   : > { %p47_p1 = scmp.ne.s32.totalorder %s589_s11, %s585_s10  ;;  %p48_p2 = scmp.eq.s32.totalorder %s601_s14, 0 }
   0xa   : > { %s851_s16 = smov (%p29_p0, %s28_s16), 0  ;;  %p53_p4 = scmp.ne.s32.totalorder %s585_s10, %s581_s9 }
   0xb   : > { %p661_p3 = por %p48_p2, %p47_p1  ;;  %s36_s19 = ssub.s32 %s597_s13, %s851_s16 }
   0xc   : > { %p54_p5 = scmp.eq.s32.totalorder %s371_s15, 0  ;;  %p38_p6 = scmp.eq.s32.totalorder %s36_s19, 0 }
   0xd   : > { %p401_p8 = scmp.lt.s32.totalorder %s601_s14, 2  ;;  %s679_s22 = sand.u32 1, %s589_s11  }
   0xe   : > { %p670_p7 = por %p54_p5, %p53_p4  ;;  %s375_s23 = sshll.u32 %s597_s13, 7 }
   0xf   : > { %s676_s21 = scalar_select %p38_p6, %s589_s11, %s40_s17  }
  0x10   : > { %s839_s20 = scalar_select %p670_p7, 1, 0 }
  0x11   : > { %s374_s24 = sshll.u32 %s679_s22, 5  ;;  %s688_s27 = scalar_lea.hbm %s834_s0, %s375_s23 }
  0x12   : > { %s135_s28 = scalar_lea.vmem [#allocation2], %s374_s24  ;;  %p692_p9 = pnand %p401_p8, %p661_p3 }
  0x13   : > { %s144_s29 = sshll.u32 %s135_s28, 4  ;;  %s132_s3 = scalar_lea.sflag [#allocation3], %s679_s22  ;;  %s696_s29 = int_to_ptr.vmem [resolvable:$true] %s144_s29 }
  0x14   : > { %s457_s4 = scalar_lea.hbm %s688_s27, 512  ;;  %p459_p12 = pneg %p692_p9 }
  0x15   : > { %p458_p11 = scmp.ne.s32.totalorder %s688_s27, %s457_s4  ;;  %s462_s7 = scalar_lea.hbm %s834_s0, 1024 }
  0x16   : > { %p463_p1 = scmp.lt.u32.totalorder %s688_s27, %s834_s0  ;;  %p464_p2 = scmp.lt.u32.totalorder %s462_s7, %s457_s4 }
  0x17   : > { %p460_p13 = pnand %p459_p12, %p458_p11  ;;  %p466_p4 = scmp.lt.u32.totalorder %s457_s4, %s688_s27 }
  0x18   : > { %p465_p3 = por %p464_p2, %p463_p1 }
  0x19   : > { %p461_p0 = pneg %p460_p13 }
  0x1a   : > { %p467_p5 = por %p466_p4, %p465_p3 }
  0x1c   : > { %p468_p6 = pnand %p467_p5, %p461_p0 }
  0x1e   : > { %471 = shalt.err (!%p468_p6)
}
  0x1f   : > { %s472_s17 = scalar_lea.vmem %s696_s29, 512  ;;  %s603_s18 = smov [#allocation2]  }
  0x20   : > { %p473_p8 = scmp.ne.s32.totalorder %s696_s29, %s472_s17  ;;  %s477_s19 = sshll.u32 %s603_s18, 4  ;;  %s478_s19 = int_to_ptr.vmem [resolvable:$false] %s477_s19 }
  0x21   : > { %s479_s24 = scalar_lea.vmem %s478_s19, 1024  ;;  %p480_p10 = scmp.lt.s32.totalorder %s696_s29, %s478_s19 }
  0x22   : > { %p475_p11 = pnand %p473_p8, %p459_p12  ;;  %p481_p1 = scmp.lt.s32.totalorder %s479_s24, %s472_s17 }
  0x24   : > { %p476_p13 = pneg %p475_p11  ;;  %p482_p2 = por %p481_p1, %p480_p10 }
  0x26   : > { %p483_p3 = pnand %p482_p2, %p476_p13 }
  0x28   : > { %486 = shalt.err (!%p483_p3)
}
  0x29   : > { %s604_s25 = smov 256   ;;  %s605_s26 = smov 128  }
  0x2a   : > { %s606_s28 = smov 8   ;;  %p175_p10 = scmp.lt.s32.totalorder %s601_s14, 3 }
  0x2b   : > { %397 = dma.hbm_to_vmem [thread:$0]  (!%p692_p9), %s688_s27, 512, %s696_s29, %s132_s3, %s604_s25, %s605_s26, %s606_s28  }
  0x2c   : > { %s376_s4 = sshll.u32 %s679_s22, 4  ;;  %s737_s7 = scalar_lea.hbm %s835_s1, %s375_s23 }
  0x2d   : > { %p841_p0 = scmp.ge.s32.totalorder %s601_s14, 1  ;;  %s158_s9 = scalar_lea.vmem [#allocation5], %s376_s4 }
  0x2e   : > { %s167_s17 = sshll.u32 %s158_s9, 4  ;;  %s155_s27 = scalar_lea.sflag [#allocation6], %s679_s22  ;;  %s745_s17 = int_to_ptr.vmem [resolvable:$true] %s167_s17 }
  0x2f   : > { %p741_p4 = pnand %p841_p0, %p175_p10  ;;  %s487_s29 = scalar_lea.hbm %s737_s7, 256 }
  0x30   : > { %p488_p5 = scmp.ne.s32.totalorder %s737_s7, %s487_s29  ;;  %s492_s18 = scalar_lea.hbm %s835_s1, 512 }
  0x31   : > { %p493_p11 = scmp.lt.u32.totalorder %s737_s7, %s835_s1  ;;  %p494_p13 = scmp.lt.u32.totalorder %s492_s18, %s487_s29 }
  0x32   : > { %p490_p6 = pnand %p488_p5, %p459_p12  ;;  %p496_p2 = scmp.lt.u32.totalorder %s487_s29, %s737_s7 }
  0x33   : > { %p495_p1 = por %p494_p13, %p493_p11 }
  0x34   : > { %p491_p8 = pneg %p490_p6 }
  0x35   : > { %p497_p3 = por %p496_p2, %p495_p1 }
  0x37   : > { %p498_p10 = pnand %p497_p3, %p491_p8 }
  0x39   : > { %501 = shalt.err (!%p498_p10)
}
  0x3a   : > { %s502_s4 = scalar_lea.vmem %s745_s17, 256  ;;  %s607_s5 = smov [#allocation5]  }
  0x3b   : > { %p503_p0 = scmp.ne.s32.totalorder %s745_s17, %s502_s4  ;;  %s507_s6 = sshll.u32 %s607_s5, 4  ;;  %s508_s6 = int_to_ptr.vmem [resolvable:$false] %s507_s6 }
  0x3c   : > { %s509_s9 = scalar_lea.vmem %s508_s6, 512  ;;  %p510_p7 = scmp.lt.s32.totalorder %s745_s17, %s508_s6 }
  0x3d   : > { %p505_p5 = pnand %p503_p0, %p459_p12  ;;  %p511_p11 = scmp.lt.s32.totalorder %s509_s9, %s502_s4 }
  0x3f   : > { %p506_p6 = pneg %p505_p5  ;;  %p512_p13 = por %p511_p11, %p510_p7 }
  0x41   : > { %p513_p1 = pnand %p512_p13, %p506_p6 }
  0x43   : > { %516 = shalt.err (!%p513_p1)
}
  0x44   : > { %400 = dma.hbm_to_vmem [thread:$0]  (!%p692_p9), %s737_s7, 256, %s745_s17, %s155_s27, %s604_s25, %s605_s26, %s606_s28  }
  0x45   : > { %179 = sbr.rel (%p741_p4) target bundleno = 260 (0x104), region = 28  ;;  %s181_s29 = sand.u32 (!%p741_p4), 1, %s585_s10  }
  0x46   : > { %s379_s23 = sshll.u32 (!%p741_p4), %s181_s29, 5  ;;  %s182_s3 = scalar_lea.sflag (!%p741_p4), [#allocation3], %s181_s29 }
  0x47   : > { %s185_s18 = scalar_lea.vmem (!%p741_p4), [#allocation2], %s379_s23  ;;  %p843_p7 = scmp.ne.s32.totalorder (!%p741_p4), %s839_s20, 0 }
  0x4c   : > { %568 = dma.done.wait (%p843_p7), %s182_s3, 512  }
  0x4d   : > { %570 = vsyncadd (%p843_p7), %s182_s3, 4294966784  ;;  %s380_s30 = sshll.u32 %s181_s29, 4  ;;  %s191_s22 = scalar_lea.sflag [#allocation6], %s181_s29 }
  0x4e   : > { %s194_s19 = scalar_lea.vmem [#allocation5], %s380_s30 }
  0x4f   : > { %572 = dma.done.wait (%p843_p7), %s191_s22, 256  }
  0x50   : > { %574 = vsyncadd (%p843_p7), %s191_s22, 4294967040  ;;  %p381_p9 = scmp.ne.s32.totalorder %s593_s12, 0 }
  0x51   : > { %vm221_vm0 = vcmask (!%p381_p9), 123904   ;;  %v608_v0 = vmov (!%p381_p9), 0.0  }
  0x52   : > { %220 = sbr.rel (%p381_p9) target bundleno = 89 (0x59), region = 40  ;;  %222 = vst.msk [vmem:[#allocation7] sm:$0x3] (!%p381_p9), %vm221_vm0, %v608_v0 }
  0x59 PF: > { %v226_v1 = vld [vmem:[%s185_s18 + $0x10] sm:$0xff]  ;;  %v224_v3 = vld [vmem:[%s185_s18] sm:$0xff]  ;;  %v227_v6 = vld [vmem:[%s185_s18 + $0x18] sm:$0xff]  ;;  %v246_v11 = vlaneseq  ;;  %vm257_vm1 = vcmask 130112   ;;  %vm268_vm2 = vcmask 1041409   ;;  %s609_s12 = smov [#allocation7]  }
  0x5a   : > { %v228_v2 = vld [vmem:[%s194_s19] sm:$0xff]  ;;  %v229_v7 = vld [vmem:[%s194_s19 + $0x8] sm:$0xff]  ;;  %s283_s20 = sshll.u32 %s609_s12, 4  ;;  %vm272_vm3 = vcmask 123904   ;;  %p790_p12 = scmp.eq.s32.totalorder %s371_s15, 1  ;;  %s284_s20 = int_to_ptr.vmem [resolvable:$true] %s283_s20 }
  0x5b   : > { %v232_v4 = vmul.f32 %v228_v2, %v226_v1  ;;  %v230_v5 = vmul.f32 %v228_v2, %v224_v3  ;;  %v225_v8 = vld [vmem:[%s185_s18 + $0x8] sm:$0xff]  ;;  %v233_v9 = vmul.f32 %v229_v7, %v227_v6  ;;  %v247_v12 = vand.u32 127, %v246_v11  ;;  %v223_v25 = vld [vmem:[#allocation7] sm:$0x3]  ;;  %s517_s26 = scalar_lea.vmem %s284_s20, 32  ;;  %p524_p3 = scmp.lt.s32.totalorder %s284_s20, %s284_s20 }
  0x5c   : > { %v231_v10 = vmul.f32 %v229_v7, %v225_v8  ;;  %v249_v13 = vshrl.u32 %v246_v11, 7  ;;  %p518_p4 = scmp.ne.s32.totalorder %s284_s20, %s517_s26  ;;  %p525_p10 = scmp.lt.s32.totalorder %s517_s26, %s517_s26 }
  0x5d   : > { %238 = vadd.xlane.f32.xlu1 %v232_v4  ;;  %234 = vadd.xlane.f32.xlu0 %v230_v5  ;;  %v252_v14 = vadd.s32 4294967288, %v247_v12 }
  0x5e   : > { %v250_v17 = vsub.s32 %v247_v12, %v249_v13  ;;  %p519_p8 = pnand %p518_p4, %p790_p12  ;;  %p526_p0 = por %p525_p10, %p524_p3 }
  0x5f   : > { %v255_v18 = vsub.s32 %v252_v14, %v249_v13 }
  0x60   : > { %p520_p2 = pneg %p519_p8 }
  0x61   : > { %240 = vadd.xlane.f32.xlu1 %v233_v9  ;;  %236 = vadd.xlane.f32.xlu0 %v231_v10 }
  0x62   : > { %p527_p5 = pnand %p526_p0, %p520_p2 }
  0xea   : > { %v239_v15 = vpop.xlane.xlu1 %238  ;;  %v235_v16 = vpop.xlane.xlu0 %234 }
  0xeb   : > { %v262_v21 = vrot.slane %v239_v15, %v250_v17  ;;  %v251_v22 = vrot.slane %v235_v16, %v250_v17 }
  0xee   : > { %v241_v19 = vpop.xlane.xlu1 %240  ;;  %v237_v20 = vpop.xlane.xlu0 %236 }
  0xef   : > { %v266_v23 = vrot.slane %v241_v19, %v255_v18  ;;  %v256_v24 = vrot.slane %v237_v20, %v255_v18 }
  0xf1   : > { %v267_v26 = vsel %vm257_vm1, %v266_v23, %v262_v21  ;;  %v258_v27 = vsel %vm257_vm1, %v256_v24, %v251_v22 }
  0xf2   : > { %v269_v28 = vsel %vm268_vm2, %v267_v26, %v258_v27 }
  0xf3   : > { %v271_v29 = vadd.f32 %v269_v28, %v223_v25 }
  0xf5   : > { %273 = vst.msk [vmem:[#allocation7] sm:$0x3] %vm272_vm3, %v271_v29 }
  0xf6   : > { %530 = shalt.err (!%p527_p5)
}
  0xf7   : > { %s531_s15 = scalar_lea.hbm %s836_s2, 32 }
  0xf8   : > { %p532_p6 = scmp.ne.s32.totalorder %s836_s2, %s531_s15  ;;  %p537_p1 = scmp.lt.u32.totalorder %s531_s15, %s836_s2 }
  0xfa   : > { %p533_p11 = pnand %p532_p6, %p790_p12 }
  0xfc   : > { %p534_p13 = pneg %p533_p11 }
  0xfe   : > { %p539_p7 = pnand %p537_p1, %p534_p13 }
 0x100   : > { %542 = shalt.err (!%p539_p7)
}
 0x101   : > { %391 = dma.vmem_to_hbm [thread:$0]  (%p790_p12), %s284_s20, 32, %s836_s2, [#allocation4]  }
 0x102   : > { %576 = dma.done.wait (%p790_p12), [#allocation4], 32  }
 0x103   : > { %578 = vsyncadd (%p790_p12), [#allocation4], 4294967264 }
 0x104 PF: > { %s19_s14 = sadd.s32 1, %s601_s14   ;;  %s845_s9 = smov %s585_s10 }
 0x105   : > { %p16_p9 = scmp.ge.s32.totalorder %s19_s14, 4   ;;  %s846_s10 = smov %s589_s11 }
 0x106   : > { %s847_s11 = smov %s676_s21  ;;  %s848_s12 = smov %s597_s13 }
 0x107   : > { %s849_s13 = smov %s851_s16  ;;  %18 = sbr.rel (!%p16_p9) target bundleno = 7 (0x7), region = 83 }
 0x10e   :  { %296 = vsyncpa [#allocation3], 1 }
 0x10f   :  { %298 = vsyncpa [#allocation3 + $0x1], 1 }
 0x110   :  { %299 = vsyncpa [#allocation6], 1 }
 0x111   :  { %301 = vsyncpa [#allocation6 + $0x1], 1 }
 0x112   :  { %302 = vsyncpa [#allocation4], 1 }
 0x113   :  { %304 = vsyncpa [#allocation4 + $0x1], 1 }

</bundles_post_ra>
